<compile_context>
chip_gen: v6e
topology: v6e:2x2x1
jax: 0.10.0
libtpu: 0.0.40
codegen_flags: <defaults>
</compile_context>

<pallas_src>
import functools
import math

import jax
import jax.numpy as jnp
from jax.experimental import pallas as pl
from jax.experimental.pallas import tpu as pltpu


def _round_up(x, m):
    return ((x + m - 1) // m) * m


def _lora_kernel(x_ref, a_ref, b_ref, o_ref, *, compute_dtype):
    # x_ref: (tm, in_features)   [native dtype; cast in-kernel on the VPU]
    # a_ref: (in_features, rank) [pre-transposed, grid-invariant -> stays resident]
    # b_ref: (rank, tn)          [pre-transposed, scaling folded in]
    # o_ref: (tm, tn)
    x = x_ref[...].astype(compute_dtype)
    xa = jnp.dot(x, a_ref[...], preferred_element_type=jnp.float32).astype(compute_dtype)
    y = jnp.dot(xa, b_ref[...], preferred_element_type=jnp.float32)
    o_ref[...] = y.astype(o_ref.dtype)


def _lora_add_kernel(x_ref, a_ref, b_ref, base_ref, o_ref, *, compute_dtype):
    # Same as above, but accumulates onto an aliased base-projection output
    # (base_ref is input_output_aliased with o_ref).
    x = x_ref[...].astype(compute_dtype)
    xa = jnp.dot(x, a_ref[...], preferred_element_type=jnp.float32).astype(compute_dtype)
    y = jnp.dot(xa, b_ref[...], preferred_element_type=jnp.float32)
    o_ref[...] = (base_ref[...].astype(jnp.float32) + y).astype(o_ref.dtype)


def lora_forward(x, lora_A, lora_B, scaling, *, base=None, tm=None, tn=None,
                 compute_dtype=None, out_dtype=None, vmem_budget_bytes=None):
    """LoRA forward: scaling * (x @ lora_A.T @ lora_B.T)  [optionally + base].

    x:    (batch, seq, in_features) -> (batch, seq, out_features)
    base: optional (batch, seq, out_features) frozen base-projection output; if given,
          it is aliased with the output and accumulated in-kernel (output dtype = base
          dtype).
    compute_dtype: optional operand dtype for the matmuls (e.g. jnp.bfloat16); x is
          cast in-kernel, accumulation stays f32.  On v5e prefer bf16 (bf16-native MXU).
    out_dtype: optional output dtype (default x.dtype); bf16 halves the writeback.
    """
    batch, seq, in_features = x.shape
    rank, in_features_a = lora_A.shape
    out_features, rank_b = lora_B.shape
    assert in_features_a == in_features and rank_b == rank

    x_dtype = jnp.dtype(x.dtype)
    cdt = jnp.dtype(compute_dtype) if compute_dtype is not None else x_dtype
    if base is not None:
        assert base.shape == (batch, seq, out_features)
        out_dt = jnp.dtype(base.dtype)          # aliased output must match base dtype
    else:
        out_dt = jnp.dtype(out_dtype) if out_dtype is not None else x_dtype

    M = batch * seq
    x2d = x.reshape(M, in_features)             # no-copy view; NO wrapper-side cast
    # Pre-transpose weights once (kills per-tile XLU transposes); fold scaling into
    # B.T so there is no per-tile epilogue multiply (also jit/tracer-safe scaling).
    a_t = jnp.asarray(lora_A).T.astype(cdt)                     # (in_features, rank)
    b_t = (jnp.asarray(lora_B) * scaling).T.astype(cdt)         # (rank, out_features)
    base2d = None if base is None else base.reshape(M, out_features)

    # --- per-generation VMEM budget ------------------------------------------------
    try:
        vmem_cap = int(pltpu.get_tpu_info().vmem_capacity_bytes)   # per-core VMEM
    except Exception:  # pragma: no cover - conservative fallback
        vmem_cap = 128 << 20
    if vmem_budget_bytes is None:
        vmem_budget_bytes = int(vmem_cap * 0.70)
    tm_cap = 1024 if vmem_cap >= (100 << 20) else 512   # bigger row tiles on 128 MiB parts

    x_bytes, c_bytes, o_bytes = x_dtype.itemsize, cdt.itemsize, out_dt.itemsize
    base_bytes = 0 if base2d is None else jnp.dtype(base2d.dtype).itemsize

    def _weight_bytes(tn_):
        # Pallas still double-buffers blocks even with a constant index_map.
        return 2 * (in_features * rank + rank * tn_) * c_bytes

    def _per_row_bytes(tn_):
        b = 2 * in_features * x_bytes            # x, double-buffered, native dtype
        if cdt != x_dtype:
            b += in_features * c_bytes           # in-kernel casted copy of x
        b += 2 * tn_ * o_bytes                   # output, double-buffered
        if base2d is not None:
            b += 2 * tn_ * base_bytes            # aliased base input, double-buffered
        return b

    def _derive_tm(tn_):
        prb = _per_row_bytes(tn_)
        avail = max(vmem_budget_bytes - _weight_bytes(tn_), 8 * prb)
        t = min(avail // prb, tm_cap, _round_up(M, 8))
        return max(8, (t // 8) * 8)              # sublane-aligned

    # --- tile selection -------------------------------------------------------------
    if tn is None:
        tn = out_features
        if tm is None:
            t = _derive_tm(tn)
            # If the row tile gets squeezed (v7x 64 MiB VMEM / huge layers), tile
            # out_features too (lane-dense multiples of 128, inner grid axis) instead
            # of shrinking tm below the 256-row sweet spot.
            while t < 256 and tn > 128 and out_features % 128 == 0:
                tn = max(128, ((tn // 2) // 128) * 128)
                t = _derive_tm(tn)
    tn = int(tn)
    if tm is None:
        tm = _derive_tm(tn)
    tm = min(int(tm), _round_up(M, 8))
    tm = max(8, (tm // 8) * 8)

    # Non-divisible extents are fine: boundary blocks use masked partial loads/stores
    # (garbage rows in a partial input block are dropped on store; computation is
    # row-independent).
    grid = (pl.cdiv(M, tm), pl.cdiv(out_features, tn))

    needed = _weight_bytes(tn) + tm * _per_row_bytes(tn)
    vmem_limit = int(min(max(int(needed * 1.5), 4 << 20), int(vmem_cap * 0.8)))
    vmem_limit = max(vmem_limit, min(needed + (1 << 20), vmem_cap))

    x_spec = pl.BlockSpec((tm, in_features), lambda i, j: (i, 0))   # reused across j
    a_spec = pl.BlockSpec((in_features, rank), lambda i, j: (0, 0))
    b_spec = pl.BlockSpec((rank, tn), lambda i, j: (0, j))
    o_spec = pl.BlockSpec((tm, tn), lambda i, j: (i, j))

    compiler_params = pltpu.CompilerParams(
        # Rows shard across TCs (megacore / v7x); col axis stays per-core so the
        # resident x block is reused across it.
        dimension_semantics=("parallel", "arbitrary"),
        vmem_limit_bytes=vmem_limit,
    )

    if base2d is None:
        out2d = pl.pallas_call(
            functools.partial(_lora_kernel, compute_dtype=cdt),
            out_shape=jax.ShapeDtypeStruct((M, out_features), out_dt),
            grid_spec=pltpu.PrefetchScalarGridSpec(
                num_scalar_prefetch=0, grid=grid,
                in_specs=[x_spec, a_spec, b_spec],
                out_specs=o_spec),
            compiler_params=compiler_params,
        )(x2d, a_t, b_t)
    else:
        out2d = pl.pallas_call(
            functools.partial(_lora_add_kernel, compute_dtype=cdt),
            out_shape=jax.ShapeDtypeStruct((M, out_features), out_dt),
            grid_spec=pltpu.PrefetchScalarGridSpec(
                num_scalar_prefetch=0, grid=grid,
                in_specs=[x_spec, a_spec, b_spec, o_spec],
                out_specs=o_spec),
            input_output_aliases={3: 0},   # base buffer reused as the output buffer
            compiler_params=compiler_params,
        )(x2d, a_t, b_t, base2d)

    return out2d.reshape(batch, seq, out_features)


def init_lora_params(key, in_features, out_features, rank):
    """Parameter init mirroring the PyTorch module.

    lora_A: kaiming_uniform_(a=sqrt(5)) -> U(-1/sqrt(fan_in), 1/sqrt(fan_in))
    lora_B: zeros
    """
    bound = 1.0 / math.sqrt(in_features)
    lora_A = jax.random.uniform(
        key, (rank, in_features), dtype=jnp.float32, minval=-bound, maxval=bound
    )
    lora_B = jnp.zeros((out_features, rank), dtype=jnp.float32)
    return lora_A, lora_B


# TODO(synk): dropout with p > 0 (training mode) is not implemented in-kernel; the
# module's default p=0.0 makes dropout the identity, which is what is computed here.


if __name__ == "__main__":
    batch, seq, in_features, out_features, rank = 2, 8, 32, 32, 8
    alpha = 16.0
    scaling = alpha  # module sets self.scaling = alpha

    key = jax.random.PRNGKey(0)
    k_x, k_a, k_b, k_base = jax.random.split(key, 4)
    x = jax.random.normal(k_x, (batch, seq, in_features), dtype=jnp.float32)

    # Faithful init (lora_B == 0 -> output is exactly zero, as in a fresh module).
    lora_A0, lora_B0 = init_lora_params(k_a, in_features, out_features, rank)
    out0 = jax.block_until_ready(lora_forward(x, lora_A0, lora_B0, scaling))
    assert out0.shape == (batch, seq, out_features)
    assert jnp.allclose(out0, jnp.zeros_like(out0))

    # Non-trivial weights to exercise the math (as if after training).
    lora_A = lora_A0
    lora_B = 0.05 * jax.random.normal(k_b, (out_features, rank), dtype=jnp.float32)
    ref = scaling * (x @ lora_A.T @ lora_B.T)

    # f32 path.
    out_f32 = jax.block_until_ready(lora_forward(x, lora_A, lora_B, scaling))
    assert out_f32.shape == (batch, seq, out_features)
    assert jnp.allclose(out_f32, ref, atol=1e-5, rtol=1e-5)

    # Non-divisible M -> masked partial last row block (no wrapper pad / slice):
    # batch=3, seq=5 -> M=15, tm=8 -> 2 row tiles, last one partial.
    x_odd = jax.random.normal(k_x, (3, 5, in_features), dtype=jnp.float32)
    ref_odd = scaling * (x_odd @ lora_A.T @ lora_B.T)
    out_odd = jax.block_until_ready(lora_forward(x_odd, lora_A, lora_B, scaling, tm=8))
    assert out_odd.shape == (3, 5, out_features)
    assert jnp.allclose(out_odd, ref_odd, atol=1e-5, rtol=1e-5)

    # bf16 compute path (in-kernel cast; loose tolerance).
    out_bf16 = jax.block_until_ready(
        lora_forward(x, lora_A, lora_B, scaling, compute_dtype=jnp.bfloat16)
    )
    assert out_bf16.shape == (batch, seq, out_features)
    assert jnp.allclose(out_bf16, ref, atol=2e-1, rtol=5e-2)

    # bf16 output path (halves the writeback stream on real shapes).
    out_bf16o = jax.block_until_ready(
        lora_forward(x, lora_A, lora_B, scaling, out_dtype=jnp.bfloat16)
    )
    assert out_bf16o.dtype == jnp.bfloat16
    assert jnp.allclose(out_bf16o.astype(jnp.float32), ref, atol=2e-1, rtol=5e-2)

    # Aliased-accumulate path: y = base + scaling * (x @ A.T @ B.T).
    base = jax.random.normal(k_base, (batch, seq, out_features), dtype=jnp.float32)
    ref_base = base + ref
    out_base = jax.block_until_ready(lora_forward(x, lora_A, lora_B, scaling, base=base))
    assert out_base.shape == (batch, seq, out_features)
    assert jnp.allclose(out_base, ref_base, atol=1e-5, rtol=1e-5)

    # 2-D grid path (column tiling of out_features) with partial row block:
    # in=64, out=256, M=15, forced tm=8 / tn=128 -> grid (2, 2).
    in2, out2 = 64, 256
    lora_A2 = jax.random.normal(k_a, (rank, in2), dtype=jnp.float32) / math.sqrt(in2)
    lora_B2 = 0.05 * jax.random.normal(k_b, (out2, rank), dtype=jnp.float32)
    x2 = jax.random.normal(k_x, (3, 5, in2), dtype=jnp.float32)
    ref2 = scaling * (x2 @ lora_A2.T @ lora_B2.T)
    out2d_path = jax.block_until_ready(
        lora_forward(x2, lora_A2, lora_B2, scaling, tm=8, tn=128)
    )
    assert out2d_path.shape == (3, 5, out2)
    assert jnp.allclose(out2d_path, ref2, atol=1e-4, rtol=1e-4)

    print("KERNEL_OK")
</pallas_src>

<mosaic_0001>
module attributes {stable_mosaic.version = 11 : i64} {
  func.func @_lora_kernel(%arg0: i32, %arg1: i32, %arg2: memref<16x32xf32, #tpu.memory_space<vmem>>, %arg3: memref<32x8xf32, #tpu.memory_space<vmem>>, %arg4: memref<8x32xf32, #tpu.memory_space<vmem>>, %arg5: memref<16x32xf32, #tpu.memory_space<vmem>>) attributes {dimension_semantics = [#tpu.dimension_semantics<parallel>, #tpu.dimension_semantics<arbitrary>], iteration_bounds = array<i64: 1, 1>, scalar_prefetch = 0 : i64, scratch_operands = 0 : i64, tpu.core_type = #tpu.core_type<tc>, window_params = [{transform_indices = @transform_0, window_bounds = array<i64: 16, 32>}, {pipeline_mode = #tpu.pipeline_mode<synchronous>, transform_indices = @transform_1, window_bounds = array<i64: 32, 8>}, {transform_indices = @transform_2, window_bounds = array<i64: 8, 32>}, {transform_indices = @transform_3, window_bounds = array<i64: 16, 32>}]} {
    %c0 = arith.constant 0 : index
    %c0_0 = arith.constant 0 : index
    %0 = vector.load %arg2[%c0, %c0_0] : memref<16x32xf32, #tpu.memory_space<vmem>>, vector<16x32xf32>
    %c0_1 = arith.constant 0 : index
    %c0_2 = arith.constant 0 : index
    %1 = vector.load %arg3[%c0_1, %c0_2] : memref<32x8xf32, #tpu.memory_space<vmem>>, vector<32x8xf32>
    %cst = arith.constant dense<0.000000e+00> : vector<16x8xf32>
    %2 = tpu.matmul %0, %1, %cst {dimension_numbers = #tpu.dot_dimension_numbers<[1], [0], [0], [1], [0, 0, 1, 1], [], []>} : vector<16x32xf32>, vector<32x8xf32>, vector<16x8xf32> -> vector<16x8xf32>
    %c0_3 = arith.constant 0 : index
    %c0_4 = arith.constant 0 : index
    %3 = vector.load %arg4[%c0_3, %c0_4] : memref<8x32xf32, #tpu.memory_space<vmem>>, vector<8x32xf32>
    %cst_5 = arith.constant dense<0.000000e+00> : vector<16x32xf32>
    %4 = tpu.matmul %2, %3, %cst_5 {dimension_numbers = #tpu.dot_dimension_numbers<[1], [0], [0], [1], [0, 0, 1, 1], [], []>} : vector<16x8xf32>, vector<8x32xf32>, vector<16x32xf32> -> vector<16x32xf32>
    %c0_6 = arith.constant 0 : index
    %c0_7 = arith.constant 0 : index
    %5 = vector.load %arg5[%c0_6, %c0_7] : memref<16x32xf32, #tpu.memory_space<vmem>>, vector<16x32xf32>
    tpu.vector_store %arg5[%c0_6, %c0_7], %4 {strides = array<i32>} : memref<16x32xf32, #tpu.memory_space<vmem>>, vector<16x32xf32>,
    return
  }
  func.func @transform_0(%arg0: i32, %arg1: i32) -> (i32, i32) {
    %c0_i32 = arith.constant 0 : i32
    %c0_i32_0 = arith.constant 0 : i32
    return %arg0, %c0_i32 : i32, i32
  }
  func.func @transform_1(%arg0: i32, %arg1: i32) -> (i32, i32) {
    %c0_i32 = arith.constant 0 : i32
    %c0_i32_0 = arith.constant 0 : i32
    %c0_i32_1 = arith.constant 0 : i32
    return %c0_i32, %c0_i32_0 : i32, i32
  }
  func.func @transform_2(%arg0: i32, %arg1: i32) -> (i32, i32) {
    %c0_i32 = arith.constant 0 : i32
    %c0_i32_0 = arith.constant 0 : i32
    return %c0_i32, %arg1 : i32, i32
  }
  func.func @transform_3(%arg0: i32, %arg1: i32) -> (i32, i32) {
    %c0_i32 = arith.constant 0 : i32
    return %arg0, %arg1 : i32, i32
  }
}

</mosaic_0001>

<bundles_post_ra>
// kernel: tpu_custom_call.1
= control target key start
LH: loop header
LB: loop body
LE: loop exit
PB: predicated region body
PF: predicated region fallthrough
CT: control target
= control target key end

     0   :  { %vm21_vm0 = vcmask 261120   ;;  %s309_s0 = inlined_call_operand.vmem [shape: f32[16,32], index: 0, kind: input, shape index: {}]   ;;  %s310_s1 = inlined_call_operand.vmem [shape: f32[32,8], index: 1, kind: input, shape index: {}]   ;;  %s311_s2 = inlined_call_operand.vmem [shape: f32[8,32], index: 2, kind: input, shape index: {}]   ;;  %s312_s3 = inlined_call_operand.hbm [shape: f32[16,32], index: 3, kind: output, shape index: {}]  }
   0x1   :  { %v20_v0 = vld [vmem:[%s310_s1 + $0x18] sm:$0xff]  ;;  %v19_v1 = vld [vmem:[%s310_s1 + $0x10] sm:$0xff]  ;;  %v15_v2 = vld [vmem:[%s309_s0] sm:$0xff] }
   0x2   :  { %217 = vmatprep.subr.mxu0 %v20_v0  ;;  %v18_v3 = vld [vmem:[%s310_s1 + $0x8] sm:$0xff]  ;;  %225 = vmatprep.mubr.msk.f32.mxu0 %vm21_vm0, %v15_v2 }
   0x3   :  { %218 = vmatpush3.msra.mxu0 %v20_v0 }
   0x4   :  { %8 = vsyncpa [#allocation3], 0  ;;  %219 = vmatprep.subr.mxu0 %v19_v1  ;;  %v17_v4 = vld [vmem:[%s310_s1] sm:$0xff]  ;;  %v16_v5 = vld [vmem:[%s309_s0 + $0x8] sm:$0xff]  ;;  %vm104_vm1 = vcmask 64512   ;;  %s258_s1 = smov [#allocation2]  }
   0x5   :  { %220 = vmatpush3.msra.mxu0 %v19_v1  ;;  %v103_v6 = vld [vmem:[%s311_s2] sm:$0xff]  ;;  %s193_s26 = sshll.u32 %s258_s1, 4  ;;  %s194_s26 = int_to_ptr.vmem [resolvable:$true] %s193_s26 }
   0x6   :  { %221 = vmatprep.subr.mxu0 %v18_v3  ;;  %228 = vmatprep.subr.mxu1 %v103_v6  ;;  %s236_s0 = scalar_lea.vmem %s194_s26, 256  ;;  %p241_p1 = scmp.lt.s32.totalorder %s194_s26, %s194_s26 }
   0x7   :  { %222 = vmatpush3.msra.mxu0 %v18_v3  ;;  %229 = vmatpush3.msra.mxu1 %v103_v6  ;;  %p237_p0 = scmp.ne.s32.totalorder %s194_s26, %s236_s0  ;;  %p242_p2 = scmp.lt.s32.totalorder %s236_s0, %s236_s0 }
   0x8   :  { %223 = vmatprep.subr.mxu0 %v17_v4 }
   0x9   :  { %224 = vmatpush3.msra.mxu0 %v17_v4  ;;  %p243_p3 = por %p242_p2, %p241_p1 }
   0xa   :  { %226 = vmatmul.mubr.msk.f32.vlgmr.msra.gmra.mxu0 %vm21_vm0, %v16_v5 }
   0xb   :  { %p244_p4 = pnand %p243_p3, %p237_p0 }
  0xca   :  { %v227_v7 = vpop.f32.mrf.mxu0 }
  0xcc   :  { %v94_v8 = vpop.f32.mrf.mxu0 }
  0xcd   :  { %230 = vmatprep.mubr.msk.f32.mxu1 %vm104_vm1, %v94_v8 }
  0xce   :  { %231 = vmatmul.mubr.msk.f32.vlgmr.msra.gmra.mxu1 %vm104_vm1, %v227_v7 }
 0x18e   :  { %v232_v9 = vpop.f32.mrf.mxu1 }
 0x18f   :  { %187 = vst.msk [vmem:[#allocation2 + $0x8] sm:$0xff] %vm21_vm0, %v232_v9 }
 0x190   :  { %v177_v10 = vpop.f32.mrf.mxu1 }
 0x191   :  { %186 = vst.msk [vmem:[#allocation2] sm:$0xff] %vm21_vm0, %v177_v10 }
 0x192   :  { %247 = shalt.err (!%p244_p4)
}
 0x193   :  { %s259_s2 = smov 128   ;;  %s260_s27 = smov 8  }
 0x194   :  { %199 = dma.vmem_to_hbm [thread:$0]  %s194_s26, 256, %s312_s3, [#allocation3], %s259_s2, %s259_s2, %s260_s27  }
 0x195   :  { %256 = dma.done.wait [#allocation3], 256  }
 0x196   :  { %257 = vsyncadd [#allocation3], 4294967040 }
 0x197   :  { %203 = vsyncpa [#allocation3], 1 }

</bundles_post_ra>
